<compile_context>
chip_gen: v7x
topology: tpu7x:2x2x1
jax: 0.10.0
libtpu: 0.0.40
codegen_flags: <defaults>
</compile_context>

<pallas_src>
import functools

import jax
import jax.numpy as jnp
from jax.experimental import pallas as pl
from jax.experimental.pallas import tpu as pltpu


# ----------------------------------------------------------------------------
# Fused kernel: one grid step == one batch element, all heads.
#   inputs : x (N, C), w_qkv (C, 3*H*D)  [already '(qkv h d)' column order],
#            w_out (H*D, C)
#   outputs: out (N, C), kv slab (N, 2*H*D)  == concat([k, v], axis=-1)
# ----------------------------------------------------------------------------
def _fused_attention_kernel(x_ref, wqkv_ref, wout_ref, o_ref, kv_ref,
                            *, n_heads, head_dim):
    H, D = n_heads, head_dim
    HD = H * D
    scale = 1.0 / (D ** 0.5)
    N = x_ref.shape[0]
    C = o_ref.shape[-1]

    # qkv projection on the MXU: bf16 operands, f32 accumulation.
    x16 = x_ref[...].astype(jnp.bfloat16)                        # (N, C)
    w16 = wqkv_ref[...].astype(jnp.bfloat16)                     # (C, 3*H*D)
    qkv = jnp.dot(x16, w16, preferred_element_type=jnp.float32)  # (N, 3*H*D)

    # Column layout is (q | k | v) contiguous, so the kv_to_cache slab is just
    # the trailing 2*H*D lanes -- one lane-dense store, no stack/copy.
    kv_ref[...] = qkv[:, HD:].astype(kv_ref.dtype)

    wout16 = wout_ref[...].astype(jnp.bfloat16)                  # (H*D, C)

    # Per-head scaled-dot-product attention + folded output projection
    # (static unroll over H heads), accumulated in an f32 register tile.
    acc = jnp.zeros((N, C), jnp.float32)
    for h in range(H):
        lo, hi = h * D, (h + 1) * D
        qh = (qkv[:, lo:hi] * scale).astype(jnp.bfloat16)        # (N, D)
        kh = qkv[:, HD + lo:HD + hi].astype(jnp.bfloat16)        # (N, D)
        vh = qkv[:, 2 * HD + lo:2 * HD + hi].astype(jnp.bfloat16)

        # scores[i, j] = q[i] . k[j] / sqrt(D)  (contract over head_dim)
        s = jax.lax.dot_general(
            qh, kh, (((1,), (1,)), ((), ())),
            preferred_element_type=jnp.float32)                   # (N, N) f32

        m = jnp.max(s, axis=-1, keepdims=True)                    # f32 stats
        p = jnp.exp(s - m)
        l = jnp.sum(p, axis=-1, keepdims=True)

        o_h = jnp.dot(p.astype(jnp.bfloat16), vh,
                      preferred_element_type=jnp.float32)          # (N, D)
        # Fold 1/l into the (N, D) output (far less VPU work than scaling the
        # (N, N) probs); approx reciprocal runs on the free EUP slot.
        o_h = o_h * pl.reciprocal(l, approx=True)

        # Fold the output projection: attn @ W_out == sum_h o_h @ W_out[h].
        acc = acc + jnp.dot(o_h.astype(jnp.bfloat16), wout16[lo:hi, :],
                            preferred_element_type=jnp.float32)

    o_ref[...] = acc.astype(o_ref.dtype)


# ----------------------------------------------------------------------------
# Forward pass of the Attention module (bias=False, dropout=0, causal=False,
# no cached_kv / rotary / position embeddings / masks -- matching defaults).
# Weights are passed in (in_features, out_features) layout so y = x @ W.
# ----------------------------------------------------------------------------
def attention_forward(x, w_qkv, w_out, n_heads, head_dim):
    B, N, C = x.shape
    H, D = n_heads, head_dim
    HD = H * D

    # One-time column permutation: PyTorch '(h d qkv)' -> contiguous
    # '(qkv h d)' so q/k/v are contiguous lane blocks in the projection output
    # (zero-cost weight shuffle; removes the strided size-3 minor-dim split).
    w_qkv_perm = jnp.transpose(
        w_qkv.reshape(C, H, D, 3), (0, 3, 1, 2)).reshape(C, 3 * HD)

    out, kv_flat = pl.pallas_call(
        functools.partial(_fused_attention_kernel, n_heads=H, head_dim=D),
        out_shape=(
            jax.ShapeDtypeStruct((B, N, C), x.dtype),
            jax.ShapeDtypeStruct((B, N, 2 * HD), x.dtype),
        ),
        grid=(B,),
        in_specs=[
            pl.BlockSpec((None, N, C), lambda b: (b, 0, 0)),       # x
            pl.BlockSpec((C, 3 * HD), lambda b: (0, 0)),           # w_qkv
            pl.BlockSpec((HD, C), lambda b: (0, 0)),               # w_out
        ],
        out_specs=(
            pl.BlockSpec((None, N, C), lambda b: (b, 0, 0)),       # out
            pl.BlockSpec((None, N, 2 * HD), lambda b: (b, 0, 0)),  # kv slab
        ),
        compiler_params=pltpu.CompilerParams(
            dimension_semantics=("parallel",),
        ),
    )(x, w_qkv_perm, w_out)

    # Lane-dense (B, N, 2*H*D) slab -> module's (B, N, 2, H, D) cache layout.
    kv_to_cache = kv_flat.reshape(B, N, 2, H, D)
    return out, kv_to_cache


# Pure-JAX f32 reference for the correctness check (original weight layout).
def attention_forward_ref(x, w_qkv, w_out, n_heads, head_dim):
    B, N, C = x.shape
    H, D = n_heads, head_dim
    qkv = (x.reshape(B * N, C) @ w_qkv).reshape(B, N, H, D, 3)
    q, k, v = qkv[..., 0], qkv[..., 1], qkv[..., 2]
    kv_to_cache = jnp.stack([k, v], axis=2)
    qh = jnp.transpose(q, (0, 2, 1, 3))
    kh = jnp.transpose(k, (0, 2, 1, 3))
    vh = jnp.transpose(v, (0, 2, 1, 3))
    s = jnp.einsum("bhid,bhjd->bhij", qh, kh) / (D ** 0.5)
    p = jax.nn.softmax(s, axis=-1)
    o = jnp.einsum("bhij,bhjd->bhid", p, vh)
    o = jnp.transpose(o, (0, 2, 1, 3)).reshape(B * N, H * D)
    out = (o @ w_out).reshape(B, N, C)
    return out, kv_to_cache


if __name__ == "__main__":
    # Module config: n_feats=32, head_dim=8, n_heads=4, bias=False,
    # dropout=0.0, causal=False.  Input: batch=2, seq=8.
    n_feats, head_dim, n_heads = 32, 8, 4
    B, N = 2, 8

    key = jax.random.PRNGKey(0)
    kx, kq, ko = jax.random.split(key, 3)

    x = jax.random.normal(kx, (B, N, n_feats), dtype=jnp.float32)

    # Deterministic parameter init (Linear default-ish uniform), stored as
    # (in_features, out_features) so kernels compute y = x @ W.
    lim_qkv = 1.0 / (n_feats ** 0.5)
    w_qkv = jax.random.uniform(
        kq, (n_feats, 3 * n_heads * head_dim), jnp.float32, -lim_qkv, lim_qkv
    )
    lim_out = 1.0 / ((n_heads * head_dim) ** 0.5)
    w_out = jax.random.uniform(
        ko, (n_heads * head_dim, n_feats), jnp.float32, -lim_out, lim_out
    )

    out, kv_to_cache = attention_forward(x, w_qkv, w_out, n_heads, head_dim)
    out = jax.block_until_ready(out)
    kv_to_cache = jax.block_until_ready(kv_to_cache)

    out_ref, kv_ref = attention_forward_ref(x, w_qkv, w_out, n_heads, head_dim)
    assert out.shape == (B, N, n_feats)
    assert kv_to_cache.shape == (B, N, 2, n_heads, head_dim)
    # bf16 MXU operands + approx reciprocal => slightly looser tolerance than
    # the pure-f32 path (values here are O(1), errors are ~1e-3).
    assert jnp.allclose(out, out_ref, atol=2e-2, rtol=2e-2)
    assert jnp.allclose(kv_to_cache, kv_ref, atol=2e-2, rtol=2e-2)

    print("KERNEL_OK")
</pallas_src>

<mosaic_0001>
module attributes {stable_mosaic.version = 11 : i64} {
  func.func @_fused_attention_kernel(%arg0: i32, %arg1: memref<1x8x32xf32, #tpu.memory_space<vmem>>, %arg2: memref<32x96xf32, #tpu.memory_space<vmem>>, %arg3: memref<32x32xf32, #tpu.memory_space<vmem>>, %arg4: memref<1x8x32xf32, #tpu.memory_space<vmem>>, %arg5: memref<1x8x64xf32, #tpu.memory_space<vmem>>) attributes {dimension_semantics = [#tpu.dimension_semantics<parallel>], iteration_bounds = array<i64: 2>, scalar_prefetch = 0 : i64, scratch_operands = 0 : i64, tpu.core_type = #tpu.core_type<tc>, window_params = [{transform_indices = @transform_0, window_bounds = array<i64: 1, 8, 32>}, {pipeline_mode = #tpu.pipeline_mode<synchronous>, transform_indices = @transform_1, window_bounds = array<i64: 32, 96>}, {pipeline_mode = #tpu.pipeline_mode<synchronous>, transform_indices = @transform_2, window_bounds = array<i64: 32, 32>}, {transform_indices = @transform_3, window_bounds = array<i64: 1, 8, 32>}, {transform_indices = @transform_4, window_bounds = array<i64: 1, 8, 64>}]} {
    %c0 = arith.constant 0 : index
    %c0_0 = arith.constant 0 : index
    %c0_1 = arith.constant 0 : index
    %0 = vector.load %arg1[%c0, %c0_0, %c0_1] : memref<1x8x32xf32, #tpu.memory_space<vmem>>, vector<1x8x32xf32>
    %1 = vector.shape_cast %0 : vector<1x8x32xf32> to vector<8x32xf32>
    %2 = arith.truncf %1 : vector<8x32xf32> to vector<8x32xbf16>
    %c0_2 = arith.constant 0 : index
    %c0_3 = arith.constant 0 : index
    %3 = vector.load %arg2[%c0_2, %c0_3] : memref<32x96xf32, #tpu.memory_space<vmem>>, vector<32x96xf32>
    %4 = arith.truncf %3 : vector<32x96xf32> to vector<32x96xbf16>
    %cst = arith.constant dense<0.000000e+00> : vector<8x96xf32>
    %5 = tpu.matmul %2, %4, %cst {dimension_numbers = #tpu.dot_dimension_numbers<[1], [0], [0], [1], [0, 0, 1, 1], [], []>} : vector<8x32xbf16>, vector<32x96xbf16>, vector<8x96xf32> -> vector<8x96xf32>
    %6 = vector.extract_strided_slice %5 {offsets = [0, 32], sizes = [8, 64], strides = [1, 1]} : vector<8x96xf32> to vector<8x64xf32>
    %c0_4 = arith.constant 0 : index
    %c0_5 = arith.constant 0 : index
    %c0_6 = arith.constant 0 : index
    %7 = vector.load %arg5[%c0_4, %c0_5, %c0_6] : memref<1x8x64xf32, #tpu.memory_space<vmem>>, vector<1x8x64xf32>
    %8 = vector.shape_cast %7 : vector<1x8x64xf32> to vector<8x64xf32>
    %9 = vector.shape_cast %6 : vector<8x64xf32> to vector<1x8x64xf32>
    tpu.vector_store %arg5[%c0_4, %c0_5, %c0_6], %9 {strides = array<i32>} : memref<1x8x64xf32, #tpu.memory_space<vmem>>, vector<1x8x64xf32>,
    %c0_7 = arith.constant 0 : index
    %c0_8 = arith.constant 0 : index
    %10 = vector.load %arg3[%c0_7, %c0_8] : memref<32x32xf32, #tpu.memory_space<vmem>>, vector<32x32xf32>
    %11 = arith.truncf %10 : vector<32x32xf32> to vector<32x32xbf16>
    %cst_9 = arith.constant 0.000000e+00 : f32
    %12 = vector.broadcast %cst_9 : f32 to vector<8x32xf32>
    %13 = vector.extract_strided_slice %5 {offsets = [0, 0], sizes = [8, 8], strides = [1, 1]} : vector<8x96xf32> to vector<8x8xf32>
    %cst_10 = arith.constant 0.353553385 : f32
    %14 = vector.broadcast %cst_10 : f32 to vector<8x8xf32>
    %15 = arith.mulf %13, %14 : vector<8x8xf32>
    %16 = arith.truncf %15 : vector<8x8xf32> to vector<8x8xbf16>
    %17 = vector.extract_strided_slice %5 {offsets = [0, 32], sizes = [8, 8], strides = [1, 1]} : vector<8x96xf32> to vector<8x8xf32>
    %18 = arith.truncf %17 : vector<8x8xf32> to vector<8x8xbf16>
    %19 = vector.extract_strided_slice %5 {offsets = [0, 64], sizes = [8, 8], strides = [1, 1]} : vector<8x96xf32> to vector<8x8xf32>
    %20 = arith.truncf %19 : vector<8x8xf32> to vector<8x8xbf16>
    %cst_11 = arith.constant dense<0.000000e+00> : vector<8x8xf32>
    %21 = tpu.matmul %16, %18, %cst_11 {dimension_numbers = #tpu.dot_dimension_numbers<[1], [1], [0], [0], [0, 0, 1, 0], [], []>} : vector<8x8xbf16>, vector<8x8xbf16>, vector<8x8xf32> -> vector<8x8xf32>
    %cst_12 = arith.constant dense<0xFF800000> : vector<8xf32>
    %22 = vector.multi_reduction <maximumf>, %21, %cst_12 [1] : vector<8x8xf32> to vector<8xf32>
    %23 = vector.shape_cast %22 : vector<8xf32> to vector<8x1xf32>
    %24 = vector.broadcast %23 : vector<8x1xf32> to vector<8x8xf32>
    %25 = arith.subf %21, %24 : vector<8x8xf32>
    %26 = math.exp %25 : vector<8x8xf32>
    %cst_13 = arith.constant dense<0.000000e+00> : vector<8xf32>
    %27 = vector.multi_reduction <add>, %26, %cst_13 [1] : vector<8x8xf32> to vector<8xf32>
    %28 = vector.shape_cast %27 : vector<8xf32> to vector<8x1xf32>
    %29 = arith.truncf %26 : vector<8x8xf32> to vector<8x8xbf16>
    %cst_14 = arith.constant dense<0.000000e+00> : vector<8x8xf32>
    %30 = tpu.matmul %29, %20, %cst_14 {dimension_numbers = #tpu.dot_dimension_numbers<[1], [0], [0], [1], [0, 0, 1, 1], [], []>} : vector<8x8xbf16>, vector<8x8xbf16>, vector<8x8xf32> -> vector<8x8xf32>
    %31 = tpu.reciprocal %28 {approx = true} : vector<8x1xf32> -> vector<8x1xf32>
    %32 = vector.broadcast %31 : vector<8x1xf32> to vector<8x8xf32>
    %33 = arith.mulf %30, %32 : vector<8x8xf32>
    %34 = arith.truncf %33 : vector<8x8xf32> to vector<8x8xbf16>
    %35 = vector.extract_strided_slice %11 {offsets = [0, 0], sizes = [8, 32], strides = [1, 1]} : vector<32x32xbf16> to vector<8x32xbf16>
    %cst_15 = arith.constant dense<0.000000e+00> : vector<8x32xf32>
    %36 = tpu.matmul %34, %35, %cst_15 {dimension_numbers = #tpu.dot_dimension_numbers<[1], [0], [0], [1], [0, 0, 1, 1], [], []>} : vector<8x8xbf16>, vector<8x32xbf16>, vector<8x32xf32> -> vector<8x32xf32>
    %37 = arith.addf %12, %36 : vector<8x32xf32>
    %38 = vector.extract_strided_slice %5 {offsets = [0, 8], sizes = [8, 8], strides = [1, 1]} : vector<8x96xf32> to vector<8x8xf32>
    %cst_16 = arith.constant 0.353553385 : f32
    %39 = vector.broadcast %cst_16 : f32 to vector<8x8xf32>
    %40 = arith.mulf %38, %39 : vector<8x8xf32>
    %41 = arith.truncf %40 : vector<8x8xf32> to vector<8x8xbf16>
    %42 = vector.extract_strided_slice %5 {offsets = [0, 40], sizes = [8, 8], strides = [1, 1]} : vector<8x96xf32> to vector<8x8xf32>
    %43 = arith.truncf %42 : vector<8x8xf32> to vector<8x8xbf16>
    %44 = vector.extract_strided_slice %5 {offsets = [0, 72], sizes = [8, 8], strides = [1, 1]} : vector<8x96xf32> to vector<8x8xf32>
    %45 = arith.truncf %44 : vector<8x8xf32> to vector<8x8xbf16>
    %cst_17 = arith.constant dense<0.000000e+00> : vector<8x8xf32>
    %46 = tpu.matmul %41, %43, %cst_17 {dimension_numbers = #tpu.dot_dimension_numbers<[1], [1], [0], [0], [0, 0, 1, 0], [], []>} : vector<8x8xbf16>, vector<8x8xbf16>, vector<8x8xf32> -> vector<8x8xf32>
    %cst_18 = arith.constant dense<0xFF800000> : vector<8xf32>
    %47 = vector.multi_reduction <maximumf>, %46, %cst_18 [1] : vector<8x8xf32> to vector<8xf32>
    %48 = vector.shape_cast %47 : vector<8xf32> to vector<8x1xf32>
    %49 = vector.broadcast %48 : vector<8x1xf32> to vector<8x8xf32>
    %50 = arith.subf %46, %49 : vector<8x8xf32>
    %51 = math.exp %50 : vector<8x8xf32>
    %cst_19 = arith.constant dense<0.000000e+00> : vector<8xf32>
    %52 = vector.multi_reduction <add>, %51, %cst_19 [1] : vector<8x8xf32> to vector<8xf32>
    %53 = vector.shape_cast %52 : vector<8xf32> to vector<8x1xf32>
    %54 = arith.truncf %51 : vector<8x8xf32> to vector<8x8xbf16>
    %cst_20 = arith.constant dense<0.000000e+00> : vector<8x8xf32>
    %55 = tpu.matmul %54, %45, %cst_20 {dimension_numbers = #tpu.dot_dimension_numbers<[1], [0], [0], [1], [0, 0, 1, 1], [], []>} : vector<8x8xbf16>, vector<8x8xbf16>, vector<8x8xf32> -> vector<8x8xf32>
    %56 = tpu.reciprocal %53 {approx = true} : vector<8x1xf32> -> vector<8x1xf32>
    %57 = vector.broadcast %56 : vector<8x1xf32> to vector<8x8xf32>
    %58 = arith.mulf %55, %57 : vector<8x8xf32>
    %59 = arith.truncf %58 : vector<8x8xf32> to vector<8x8xbf16>
    %60 = vector.extract_strided_slice %11 {offsets = [8, 0], sizes = [8, 32], strides = [1, 1]} : vector<32x32xbf16> to vector<8x32xbf16>
    %cst_21 = arith.constant dense<0.000000e+00> : vector<8x32xf32>
    %61 = tpu.matmul %59, %60, %cst_21 {dimension_numbers = #tpu.dot_dimension_numbers<[1], [0], [0], [1], [0, 0, 1, 1], [], []>} : vector<8x8xbf16>, vector<8x32xbf16>, vector<8x32xf32> -> vector<8x32xf32>
    %62 = arith.addf %37, %61 : vector<8x32xf32>
    %63 = vector.extract_strided_slice %5 {offsets = [0, 16], sizes = [8, 8], strides = [1, 1]} : vector<8x96xf32> to vector<8x8xf32>
    %cst_22 = arith.constant 0.353553385 : f32
    %64 = vector.broadcast %cst_22 : f32 to vector<8x8xf32>
    %65 = arith.mulf %63, %64 : vector<8x8xf32>
    %66 = arith.truncf %65 : vector<8x8xf32> to vector<8x8xbf16>
    %67 = vector.extract_strided_slice %5 {offsets = [0, 48], sizes = [8, 8], strides = [1, 1]} : vector<8x96xf32> to vector<8x8xf32>
    %68 = arith.truncf %67 : vector<8x8xf32> to vector<8x8xbf16>
    %69 = vector.extract_strided_slice %5 {offsets = [0, 80], sizes = [8, 8], strides = [1, 1]} : vector<8x96xf32> to vector<8x8xf32>
    %70 = arith.truncf %69 : vector<8x8xf32> to vector<8x8xbf16>
    %cst_23 = arith.constant dense<0.000000e+00> : vector<8x8xf32>
    %71 = tpu.matmul %66, %68, %cst_23 {dimension_numbers = #tpu.dot_dimension_numbers<[1], [1], [0], [0], [0, 0, 1, 0], [], []>} : vector<8x8xbf16>, vector<8x8xbf16>, vector<8x8xf32> -> vector<8x8xf32>
    %cst_24 = arith.constant dense<0xFF800000> : vector<8xf32>
    %72 = vector.multi_reduction <maximumf>, %71, %cst_24 [1] : vector<8x8xf32> to vector<8xf32>
    %73 = vector.shape_cast %72 : vector<8xf32> to vector<8x1xf32>
    %74 = vector.broadcast %73 : vector<8x1xf32> to vector<8x8xf32>
    %75 = arith.subf %71, %74 : vector<8x8xf32>
    %76 = math.exp %75 : vector<8x8xf32>
    %cst_25 = arith.constant dense<0.000000e+00> : vector<8xf32>
    %77 = vector.multi_reduction <add>, %76, %cst_25 [1] : vector<8x8xf32> to vector<8xf32>
    %78 = vector.shape_cast %77 : vector<8xf32> to vector<8x1xf32>
    %79 = arith.truncf %76 : vector<8x8xf32> to vector<8x8xbf16>
    %cst_26 = arith.constant dense<0.000000e+00> : vector<8x8xf32>
    %80 = tpu.matmul %79, %70, %cst_26 {dimension_numbers = #tpu.dot_dimension_numbers<[1], [0], [0], [1], [0, 0, 1, 1], [], []>} : vector<8x8xbf16>, vector<8x8xbf16>, vector<8x8xf32> -> vector<8x8xf32>
    %81 = tpu.reciprocal %78 {approx = true} : vector<8x1xf32> -> vector<8x1xf32>
    %82 = vector.broadcast %81 : vector<8x1xf32> to vector<8x8xf32>
    %83 = arith.mulf %80, %82 : vector<8x8xf32>
    %84 = arith.truncf %83 : vector<8x8xf32> to vector<8x8xbf16>
    %85 = vector.extract_strided_slice %11 {offsets = [16, 0], sizes = [8, 32], strides = [1, 1]} : vector<32x32xbf16> to vector<8x32xbf16>
    %cst_27 = arith.constant dense<0.000000e+00> : vector<8x32xf32>
    %86 = tpu.matmul %84, %85, %cst_27 {dimension_numbers = #tpu.dot_dimension_numbers<[1], [0], [0], [1], [0, 0, 1, 1], [], []>} : vector<8x8xbf16>, vector<8x32xbf16>, vector<8x32xf32> -> vector<8x32xf32>
    %87 = arith.addf %62, %86 : vector<8x32xf32>
    %88 = vector.extract_strided_slice %5 {offsets = [0, 24], sizes = [8, 8], strides = [1, 1]} : vector<8x96xf32> to vector<8x8xf32>
    %cst_28 = arith.constant 0.353553385 : f32
    %89 = vector.broadcast %cst_28 : f32 to vector<8x8xf32>
    %90 = arith.mulf %88, %89 : vector<8x8xf32>
    %91 = arith.truncf %90 : vector<8x8xf32> to vector<8x8xbf16>
    %92 = vector.extract_strided_slice %5 {offsets = [0, 56], sizes = [8, 8], strides = [1, 1]} : vector<8x96xf32> to vector<8x8xf32>
    %93 = arith.truncf %92 : vector<8x8xf32> to vector<8x8xbf16>
    %94 = vector.extract_strided_slice %5 {offsets = [0, 88], sizes = [8, 8], strides = [1, 1]} : vector<8x96xf32> to vector<8x8xf32>
    %95 = arith.truncf %94 : vector<8x8xf32> to vector<8x8xbf16>
    %cst_29 = arith.constant dense<0.000000e+00> : vector<8x8xf32>
    %96 = tpu.matmul %91, %93, %cst_29 {dimension_numbers = #tpu.dot_dimension_numbers<[1], [1], [0], [0], [0, 0, 1, 0], [], []>} : vector<8x8xbf16>, vector<8x8xbf16>, vector<8x8xf32> -> vector<8x8xf32>
    %cst_30 = arith.constant dense<0xFF800000> : vector<8xf32>
    %97 = vector.multi_reduction <maximumf>, %96, %cst_30 [1] : vector<8x8xf32> to vector<8xf32>
    %98 = vector.shape_cast %97 : vector<8xf32> to vector<8x1xf32>
    %99 = vector.broadcast %98 : vector<8x1xf32> to vector<8x8xf32>
    %100 = arith.subf %96, %99 : vector<8x8xf32>
    %101 = math.exp %100 : vector<8x8xf32>
    %cst_31 = arith.constant dense<0.000000e+00> : vector<8xf32>
    %102 = vector.multi_reduction <add>, %101, %cst_31 [1] : vector<8x8xf32> to vector<8xf32>
    %103 = vector.shape_cast %102 : vector<8xf32> to vector<8x1xf32>
    %104 = arith.truncf %101 : vector<8x8xf32> to vector<8x8xbf16>
    %cst_32 = arith.constant dense<0.000000e+00> : vector<8x8xf32>
    %105 = tpu.matmul %104, %95, %cst_32 {dimension_numbers = #tpu.dot_dimension_numbers<[1], [0], [0], [1], [0, 0, 1, 1], [], []>} : vector<8x8xbf16>, vector<8x8xbf16>, vector<8x8xf32> -> vector<8x8xf32>
    %106 = tpu.reciprocal %103 {approx = true} : vector<8x1xf32> -> vector<8x1xf32>
    %107 = vector.broadcast %106 : vector<8x1xf32> to vector<8x8xf32>
    %108 = arith.mulf %105, %107 : vector<8x8xf32>
    %109 = arith.truncf %108 : vector<8x8xf32> to vector<8x8xbf16>
    %110 = vector.extract_strided_slice %11 {offsets = [24, 0], sizes = [8, 32], strides = [1, 1]} : vector<32x32xbf16> to vector<8x32xbf16>
    %cst_33 = arith.constant dense<0.000000e+00> : vector<8x32xf32>
    %111 = tpu.matmul %109, %110, %cst_33 {dimension_numbers = #tpu.dot_dimension_numbers<[1], [0], [0], [1], [0, 0, 1, 1], [], []>} : vector<8x8xbf16>, vector<8x32xbf16>, vector<8x32xf32> -> vector<8x32xf32>
    %112 = arith.addf %87, %111 : vector<8x32xf32>
    %c0_34 = arith.constant 0 : index
    %c0_35 = arith.constant 0 : index
    %c0_36 = arith.constant 0 : index
    %113 = vector.load %arg4[%c0_34, %c0_35, %c0_36] : memref<1x8x32xf32, #tpu.memory_space<vmem>>, vector<1x8x32xf32>
    %114 = vector.shape_cast %113 : vector<1x8x32xf32> to vector<8x32xf32>
    %115 = vector.shape_cast %112 : vector<8x32xf32> to vector<1x8x32xf32>
    tpu.vector_store %arg4[%c0_34, %c0_35, %c0_36], %115 {strides = array<i32>} : memref<1x8x32xf32, #tpu.memory_space<vmem>>, vector<1x8x32xf32>,
    return
  }
  func.func @transform_0(%arg0: i32) -> (i32, i32, i32) {
    %c0_i32 = arith.constant 0 : i32
    %c0_i32_0 = arith.constant 0 : i32
    %c0_i32_1 = arith.constant 0 : i32
    return %arg0, %c0_i32, %c0_i32_0 : i32, i32, i32
  }
  func.func @transform_1(%arg0: i32) -> (i32, i32) {
    %c0_i32 = arith.constant 0 : i32
    %c0_i32_0 = arith.constant 0 : i32
    %c0_i32_1 = arith.constant 0 : i32
    return %c0_i32, %c0_i32_0 : i32, i32
  }
  func.func @transform_2(%arg0: i32) -> (i32, i32) {
    %c0_i32 = arith.constant 0 : i32
    %c0_i32_0 = arith.constant 0 : i32
    %c0_i32_1 = arith.constant 0 : i32
    return %c0_i32, %c0_i32_0 : i32, i32
  }
  func.func @transform_3(%arg0: i32) -> (i32, i32, i32) {
    %c0_i32 = arith.constant 0 : i32
    %c0_i32_0 = arith.constant 0 : i32
    %c0_i32_1 = arith.constant 0 : i32
    return %arg0, %c0_i32, %c0_i32_0 : i32, i32, i32
  }
  func.func @transform_4(%arg0: i32) -> (i32, i32, i32) {
    %c0_i32 = arith.constant 0 : i32
    %c0_i32_0 = arith.constant 0 : i32
    %c0_i32_1 = arith.constant 0 : i32
    return %arg0, %c0_i32, %c0_i32_0 : i32, i32, i32
  }
}

</mosaic_0001>

<bundles_post_ra>
// kernel: tpu_custom_call.1
= control target key start
LH: loop header
LB: loop body
LE: loop exit
PB: predicated region body
PF: predicated region fallthrough
CT: control target
= control target key end

     0   :  { %10 = vsyncpa [#allocation3], 0  ;;  %s1953_s0 = inlined_call_operand.hbm [shape: f32[2,8,32], index: 0, kind: input, shape index: {}]   ;;  %s1954_s1 = inlined_call_operand.hbm [shape: f32[32,96], index: 1, kind: input, shape index: {}]   ;;  %s1955_s2 = inlined_call_operand.hbm [shape: f32[32,32], index: 2, kind: input, shape index: {}]   ;;  %s1956_s3 = inlined_call_operand.hbm [shape: f32[2,8,32], index: 3, kind: output, shape index: {0}]   ;;  %s1957_s4 = inlined_call_operand.hbm [shape: f32[2,8,64], index: 4, kind: output, shape index: {1}]  }
   0x1   :  { %12 = vsyncpa [#allocation3 + $0x1], 0 }
   0x2   :  { %13 = vsyncpa [#allocation6], 0 }
   0x3   :  { %14 = vsyncpa [#allocation4], 0 }
   0x4   :  { %16 = vsyncpa [#allocation4 + $0x1], 0 }
   0x5   :  { %17 = vsyncpa [#allocation10], 0 }
   0x6   :  { %19 = vsyncpa [#allocation10 + $0x1], 0  ;;  %s1600_s15 = smov 0   ;;  %s1602_s16 = smov 0  }
   0x7   :  { %s1604_s17 = smov 0   ;;  %s1606_s18 = smov 0  }
   0x8 LB: > { %s1621_s19 = sadd.s32 4294967295, %s1553_s18   ;;  %s1111_s20 = sadd.s32 4294967294, %s1553_s18   ;;  %s1553_s18 = sphi %s1606_s18, %s1977_s18   ;;  %s1549_s17 = sphi %s1604_s17, %s1976_s17   ;;  %s1545_s16 = sphi %s1602_s16, %s1975_s16   ;;  %s1541_s15 = sphi %s1600_s15, %s1974_s15  }
   0x9   : > { %p45_p0 = scmp.ne.s32.totalorder %s1545_s16, %s1541_s15  ;;  %p1958_p1 = scmp.eq.s32.totalorder %s1621_s19, 0 }
   0xa   : > { %p117_p3 = scmp.eq.s32.totalorder %s1111_s20, 1  ;;  %p1112_p5 = scmp.ge.s32.totalorder %s1553_s18, 1 }
   0xb   : > { %p1630_p4 = por %p1958_p1, %p45_p0  ;;  %p150_p7 = scmp.lt.s32.totalorder %s1553_s18, 3 }
   0xc   : > { %p1635_p6 = por %p117_p3, %p45_p0  ;;  %s1555_s24 = smov [#allocation5]  }
   0xd   : > { %s1961_s21 = scalar_select %p1630_p4, 1, 0 }
   0xe   : > { %s1962_s22 = scalar_select %p1635_p6, 1, 0 }
   0xf   : > { %p1640_p8 = pnand %p1112_p5, %p150_p7  ;;  %s162_s25 = sshll.u32 %s1555_s24, 4  ;;  %s1644_s25 = int_to_ptr.vmem [resolvable:$true] %s162_s25 }
  0x10   : > { %s1556_s27 = smov [#allocation7]   ;;  %s1365_s5 = scalar_lea.hbm %s1954_s1, 512 }
  0x11   : > { %p1276_p9 = pneg %p1640_p8  ;;  %s175_s28 = sshll.u32 %s1556_s27, 4  ;;  %s1655_s28 = int_to_ptr.vmem [resolvable:$true] %s175_s28 }
  0x12   : > { %p1366_p12 = scmp.ne.s32.totalorder %s1954_s1, %s1365_s5  ;;  %p1372_p5 = scmp.lt.u32.totalorder %s1365_s5, %s1954_s1 }
  0x13   : > { %p1651_p11 = pnand %p1276_p9, %p1958_p1 }
  0x15   : > { %p1367_p13 = pneg %p1651_p11 }
  0x17   : > { %p1368_p0 = pnand %p1367_p13, %p1366_p12 }
  0x19   : > { %p1369_p3 = pneg %p1368_p0 }
  0x1b   : > { %p1374_p7 = pnand %p1372_p5, %p1369_p3 }
  0x1d   : > { %1377 = shalt.err (!%p1374_p7)
}
  0x1e   : > { %s1378_s10 = scalar_lea.vmem %s1644_s25, 512  ;;  %p1386_p2 = scmp.lt.s32.totalorder %s1644_s25, %s1644_s25 }
  0x1f   : > { %p1379_p9 = scmp.ne.s32.totalorder %s1644_s25, %s1378_s10  ;;  %p1387_p12 = scmp.lt.s32.totalorder %s1378_s10, %s1378_s10 }
  0x21   : > { %p1381_p10 = pnand %p1379_p9, %p1367_p13  ;;  %p1388_p0 = por %p1387_p12, %p1386_p2 }
  0x23   : > { %p1382_p1 = pneg %p1381_p10 }
  0x25   : > { %p1389_p6 = pnand %p1388_p0, %p1382_p1 }
  0x27   : > { %1392 = shalt.err (!%p1389_p6)
}
  0x28   : > { %s1557_s11 = smov 128   ;;  %s1558_s12 = smov 8  }
  0x29   : > { %1279 = dma.hbm_to_vmem [thread:$0]  (!%p1651_p11), %s1954_s1, 512, %s1644_s25, [#allocation6], %s1557_s11, %s1557_s11, %s1558_s12  }
  0x2a   : > { %s1393_s27 = scalar_lea.hbm %s1955_s2, 512 }
  0x2b   : > { %p1394_p2 = scmp.ne.s32.totalorder %s1955_s2, %s1393_s27  ;;  %p1400_p10 = scmp.lt.u32.totalorder %s1393_s27, %s1955_s2 }
  0x2d   : > { %p1396_p1 = pnand %p1394_p2, %p1367_p13 }
  0x2f   : > { %p1397_p6 = pneg %p1396_p1 }
  0x31   : > { %p1402_p3 = pnand %p1400_p10, %p1397_p6 }
  0x33   : > { %1405 = shalt.err (!%p1402_p3)
}
  0x34   : > { %s1406_s25 = scalar_lea.vmem %s1655_s28, 512  ;;  %p1414_p12 = scmp.lt.s32.totalorder %s1655_s28, %s1655_s28 }
  0x35   : > { %p1407_p5 = scmp.ne.s32.totalorder %s1655_s28, %s1406_s25  ;;  %p1415_p0 = scmp.lt.s32.totalorder %s1406_s25, %s1406_s25 }
  0x37   : > { %p1409_p7 = pnand %p1407_p5, %p1367_p13  ;;  %p1416_p2 = por %p1415_p0, %p1414_p12 }
  0x39   : > { %p1410_p9 = pneg %p1409_p7 }
  0x3b   : > { %p1417_p1 = pnand %p1416_p2, %p1410_p9 }
  0x3d   : > { %1420 = shalt.err (!%p1417_p1)
}
  0x3e   : > { %1282 = dma.hbm_to_vmem [thread:$0]  (!%p1651_p11), %s1955_s2, 512, %s1655_s28, [#allocation6], %s1557_s11, %s1557_s11, %s1558_s12  }
  0x3f   : > { %s1710_s9 = sadd.s32 1, %s1553_s18   ;;  %s32_s26 = sadd.s32 1, %s1549_s17 }
  0x40   : > { %s29_s10 = ssub.s32 %s1553_s18, %s1710_s9  ;;  %p39_p13 = scmp.ne.s32.totalorder %s1549_s17, %s1545_s16 }
  0x41   : > { %p30_p6 = scmp.eq.s32.totalorder %s29_s10, 0  ;;  %p40_p10 = scmp.eq.s32.totalorder %s1553_s18, 0 }
  0x42   : > { %p1965_p3 = scmp.eq.s32.totalorder %s1621_s19, 1  ;;  %p1296_p7 = scmp.lt.s32.totalorder %s1553_s18, 2 }
  0x43   : > { %s1726_s14 = scalar_select %p30_p6, %s1549_s17, %s32_s26  }
  0x44   : > { %p1720_p5 = por %p1965_p3, %p39_p13  ;;  %p41_p9 = por %p40_p10, %p39_p13 }
  0x45   : > { %s189_s20 = sand.u32 1, %s1549_s17   ;;  %s1117_s28 = sshll.u32 %s1553_s18, 7 }
  0x46   : > { %s1966_s13 = scalar_select %p1720_p5, 1, 0 }
  0x47   : > { %s1116_s24 = sshll.u32 %s189_s20, 3  ;;  %s1733_s27 = scalar_lea.hbm %s1953_s0, %s1117_s28 }
  0x48   : > { %s193_s29 = scalar_lea.vmem [#allocation2], %s1116_s24  ;;  %p1737_p11 = pnand %p1296_p7, %p41_p9 }
  0x49   : > { %s200_s30 = sshll.u32 %s193_s29, 4  ;;  %s190_s6 = scalar_lea.sflag [#allocation3], %s189_s20  ;;  %s1735_s30 = int_to_ptr.vmem [resolvable:$true] %s200_s30 }
  0x4a   : > { %s1421_s25 = scalar_lea.hbm %s1733_s27, 128  ;;  %p1423_p0 = pneg %p1737_p11 }
  0x4b   : > { %p1422_p12 = scmp.ne.s32.totalorder %s1733_s27, %s1421_s25  ;;  %s1426_s26 = scalar_lea.hbm %s1953_s0, 256 }
  0x4c   : > { %p1427_p13 = scmp.lt.u32.totalorder %s1733_s27, %s1953_s0  ;;  %p1428_p6 = scmp.lt.u32.totalorder %s1426_s26, %s1421_s25 }
  0x4d   : > { %p1424_p2 = pnand %p1423_p0, %p1422_p12  ;;  %p1430_p3 = scmp.lt.u32.totalorder %s1421_s25, %s1733_s27 }
  0x4e   : > { %p1429_p10 = por %p1428_p6, %p1427_p13 }
  0x4f   : > { %p1425_p1 = pneg %p1424_p2 }
  0x50   : > { %p1431_p7 = por %p1430_p3, %p1429_p10 }
  0x52   : > { %p1432_p9 = pnand %p1431_p7, %p1425_p1 }
  0x54   : > { %1435 = shalt.err (!%p1432_p9)
}
  0x55   : > { %s1436_s20 = scalar_lea.vmem %s1735_s30, 128  ;;  %s1559_s28 = smov [#allocation2]  }
  0x56   : > { %p1437_p12 = scmp.ne.s32.totalorder %s1735_s30, %s1436_s20  ;;  %s1441_s11 = sshll.u32 %s1559_s28, 4  ;;  %s1442_s11 = int_to_ptr.vmem [resolvable:$false] %s1441_s11 }
  0x57   : > { %s1443_s12 = scalar_lea.vmem %s1442_s11, 256  ;;  %p1444_p4 = scmp.lt.s32.totalorder %s1735_s30, %s1442_s11 }
  0x58   : > { %p1439_p2 = pnand %p1437_p12, %p1423_p0  ;;  %p1445_p13 = scmp.lt.s32.totalorder %s1443_s12, %s1436_s20 }
  0x5a   : > { %p1440_p5 = pneg %p1439_p2  ;;  %p1446_p6 = por %p1445_p13, %p1444_p4 }
  0x5c   : > { %p1447_p10 = pnand %p1446_p6, %p1440_p5 }
  0x5e   : > { %1450 = shalt.err (!%p1447_p10)
}
  0x5f   : > { %1286 = dma.hbm_to_vmem [thread:$0]  (!%p1737_p11), %s1733_s27, 128, %s1735_s30, %s190_s6  }
  0x60   : > { %209 = sbr.rel (%p1640_p8) target bundleno = 2038 (0x7f6), region = 32  ;;  %s1769_s29 = sand.u32 (!%p1640_p8), 1, %s1545_s16  }
  0x61   : > { %s1772_s25 = sshll.u32 (!%p1640_p8), %s1769_s29, 3  ;;  %s212_s7 = scalar_lea.sflag (!%p1640_p8), [#allocation3], %s1769_s29 }
  0x62   : > { %s215_s8 = scalar_lea.vmem (!%p1640_p8), [#allocation2], %s1772_s25  ;;  %p1968_p4 = scmp.ne.s32.totalorder (!%p1640_p8), %s1961_s21, 0 }
  0x67   : > { %1524 = dma.done.wait (%p1968_p4), %s212_s7, 128  }
  0x68   : > { %1526 = vsyncadd (%p1968_p4), %s212_s7, 4294967168  ;;  %p1969_p5 = scmp.eq.s32.totalorder %s1621_s19, 0 }
  0x6a   : > { %1528 = dma.done.wait (%p1969_p5), [#allocation6], 1024   ;;  %p1970_p8 = pmov %p1969_p5 }
  0x6b   : > { %v1560_v0 = vmov 0.0   ;;  %vm1561_vm0 = vmmov 0   ;;  %v256_v1 = vld [vmem:[#allocation5] sm:$0xff]  ;;  %v257_v2 = vld [vmem:[#allocation5 + $0x8] sm:$0xff]  ;;  %v258_v3 = vld [vmem:[#allocation5 + $0x10] sm:$0xff]  ;;  %vm262_vm1 = vcmask 261120  }
  0x6c   : > { %1530 = vsyncadd (%p1970_p8), [#allocation6], 4294966272  ;;  %1170 = vmatprep.subr.bf16.mxu0 %v1560_v0  ;;  %1174 = vmatprep.mubr.msk.bf16.mxu0 %vm1561_vm0, %v1560_v0  ;;  %v260_v4 = vpack.c.bf16 %v257_v2, %v256_v1  ;;  %v259_v5 = vld [vmem:[#allocation5 + $0x18] sm:$0xff]  ;;  %s1562_s21 = smov 96   ;;  %s1563_s23 = smov 120   ;;  %vm324_vm2 = vcmask 64512  }
  0x6d   : > { %1178 = vmatprep.subr.bf16.mxu1 %v1560_v0  ;;  %1180 = vmatprep.mubr.msk.bf16.mxu1 %vm1561_vm0, %v1560_v0  ;;  %v261_v6 = vpack.c.bf16 %v259_v5, %v258_v3  ;;  %v254_v7 = vld [vmem:[%s215_s8] sm:$0xff]  ;;  %s1564_s27 = smov 88   ;;  %s1565_s30 = smov 56   ;;  %vm386_vm3 = vcmask 1043456   ;;  %v312_v51 = vld [vmem:[#allocation7] sm:$0xff]  ;;  %v313_v52 = vld [vmem:[#allocation7 + $0x8] sm:$0xff] }
  0x6e   : > { %1171 = vmatpush3.bf16.msra.mxu0 %v260_v4  ;;  %v255_v8 = vpack.c.bf16 %v254_v7, %v254_v7  ;;  %s1566_s5 = smov 80   ;;  %s1567_s6 = smov 64   ;;  %v316_v53 = vpack.c.bf16 %v313_v52, %v312_v51  ;;  %vm310_vm4 = vcmask 523264  }
  0x6f   : > { %1172 = vmatprep.subr.bf16.mxu0 %v1560_v0  ;;  %s1568_s26 = smov 112   ;;  %s1569_s10 = smov 48  }
  0x70   : > { %s1570_s24 = smov 72   ;;  %s1571_s20 = smov 104   ;;  %v546_v54 = vrot.slane %v316_v53, 4 }
  0x71   : > { %s1572_s28 = smov 40   ;;  %s252_s11 = scalar_lea.vmem [#allocation9], %s1772_s25 }
  0x72   : > { %1173 = vmatpush3.bf16.msra.mxu0 %v261_v6  ;;  %v551_v55 = vsel %vm386_vm3, %v546_v54, 0  ;;  %s1139_s12 = sshll.u32 %s1621_s19, 7  ;;  %p1971_p0 = scmp.ne.s32.totalorder %s1966_s13, 0 }
  0x73   : > { %1184 = vmatprep.subr.bf16.mxu0 %v1560_v0 }
  0x75   : > { %1175 = vmatmul.mubr.msk.bf16.vlgmr.msra.gmra.mrb[0].mxu0 %vm262_vm1, %v255_v8 }
  0x76   : > { %1186 = vmatprep.mubr.msk.bf16.mxu0 %vm1561_vm0, %v1560_v0 }
 0x148   : > { %v1795_v9 = vpop.f32.mrb[0].mxu0 }
 0x149   : > { %v318_v10 = vmul.f32 0.35355338, %v1795_v9  ;;  %v1800_v11 = vpack.c.bf16 %v1795_v9, %v1795_v9  ;;  %v1176_v12 = vpop.f32.mrb[1].mxu0 }
 0x14a   : > { %v303_v13 = vpop.f32.mrb[2].mxu0 }
 0x14b   : > { %v319_v14 = vpack.c.bf16 %v318_v10, %v318_v10  ;;  %322 = vrot.lane.b32.xlu0 %v1800_v11, %s1562_s21  ;;  %v1177_v15 = vpop.f32.mrb[3].mxu0 }
 0x14d   : > { %434 = vrot.lane.b32.xlu1 %v319_v14, %s1563_s23  ;;  %s990_s23 = sshll.u32 %s252_s11, 4  ;;  %s991_s23 = int_to_ptr.vmem [resolvable:$true] %s990_s23 }
 0x14f   : > { %436 = vrot.lane.b32.xlu0 %v1800_v11, %s1564_s27  ;;  %s964_s27 = scalar_lea.sflag [#allocation10], %s1769_s29 }
 0x1bd   : > { %v323_v16 = vpop.permute.xlu0 %322 }
 0x1be   : > { %v329_v17 = vsel %vm324_vm2, %v323_v16, 0 }
 0x1bf   : > { %1179 = vmatpush3.bf16.xpose.msra.mxu1 %v329_v17  ;;  %v435_v20 = vpop.permute.xlu1 %434 }
 0x1c0   : > { %1190 = vmatprep.subr.bf16.mxu1 %v1560_v0 }
 0x1c1   : > { %v437_v18 = vpop.permute.xlu0 %436 }
 0x1c2   : > { %v442_v19 = vsel %vm324_vm2, %v437_v18, 0 }
 0x1c6   : > { %1181 = vmatmul.mubr.msk.bf16.vlgmr.msra.gmra.mrb[0].mxu1 %vm324_vm2, %v319_v14 }
 0x1c7   : > { %1191 = vmatpush3.bf16.xpose.msra.mxu1 %v442_v19  ;;  %1192 = vmatprep.mubr.msk.bf16.mxu1 %vm1561_vm0, %v1560_v0 }
 0x1c8   : > { %1202 = vmatprep.subr.bf16.mxu1 %v1560_v0 }
 0x1ce   : > { %1193 = vmatmul.mubr.msk.bf16.vlgmr.msra.gmra.mrb[4].mxu1 %vm324_vm2, %v435_v20 }
 0x1cf   : > { %1204 = vmatprep.mubr.msk.bf16.mxu1 %vm1561_vm0, %v1560_v0  ;;  %1203 = vmatpush3.bf16.msra.mxu1 %v551_v55 }
 0x1d0   : > { %1208 = vmatprep.subr.bf16.mxu1 %v1560_v0 }
 0x299   : > { %v365_v21 = vpop.f32.mrb[0].mxu1 }
 0x29a   : > { %v1182_v22 = vpop.f32.mrb[1].mxu1  ;;  %v371_v23 = vsel %vm324_vm2, %v365_v21, -inf }
 0x29b   : > { %372 = vmax.xlane.f32.xlu1 %v371_v23  ;;  %v368_v24 = vpop.f32.mrb[2].mxu1 }
 0x29c   : > { %v1183_v25 = vpop.f32.mrb[3].mxu1 }
 0x2a1   : > { %v478_v26 = vpop.f32.mrb[4].mxu1 }
 0x2a2   : > { %v1194_v27 = vpop.f32.mrb[5].mxu1  ;;  %v484_v28 = vsel %vm324_vm2, %v478_v26, -inf }
 0x2a3   : > { %485 = vmax.xlane.f32.xlu0 %v484_v28  ;;  %v481_v29 = vpop.f32.mrb[6].mxu1  ;;  %v315_v27 = vld [vmem:[#allocation7 + $0x18] sm:$0xff] }
 0x2a4   : > { %v1195_v30 = vpop.f32.mrb[7].mxu1 }
 0x2ac   : > { %494 = vrot.lane.b32.xlu1 %v1800_v11, %s1565_s30  ;;  %s1451_s30 = scalar_lea.vmem %s991_s23, 128 }
 0x2ad   : > { %p1452_p11 = scmp.ne.s32.totalorder %s991_s23, %s1451_s30 }
 0x2af   : > { %p1453_p1 = pnand %p1452_p11, %p1971_p0 }
 0x2b0   : > { %641 = vrot.lane.b32.xlu1 %v1800_v11, %s1566_s5  ;;  %s1573_s5 = smov [#allocation9]  }
 0x2b1   : > { %p1454_p3 = pneg %p1453_p1 }
 0x2b9   : > { %381 = vrot.lane.b32.xlu0 %v1800_v11, %s1567_s6  ;;  %s1455_s6 = sshll.u32 %s1573_s5, 4  ;;  %s1456_s6 = int_to_ptr.vmem [resolvable:$false] %s1455_s6 }
 0x2ba   : > { %p1458_p7 = scmp.lt.s32.totalorder %s991_s23, %s1456_s6 }
 0x2bd   : > { %639 = vrot.lane.b32.xlu0 %v319_v14, %s1568_s26  ;;  %s1457_s26 = scalar_lea.vmem %s1456_s6, 256 }
 0x2be   : > { %p1459_p9 = scmp.lt.s32.totalorder %s1457_s26, %s1451_s30 }
 0x2c0   : > { %p1460_p12 = por %p1459_p9, %p1458_p7 }
 0x2c1   : > { %699 = vrot.lane.b32.xlu0 %v1800_v11, %s1569_s10 }
 0x2c2   : > { %p1461_p2 = pnand %p1460_p12, %p1454_p3 }
 0x2c5   : > { %799 = vrot.lane.b32.xlu0 %v1800_v11, %s1570_s24 }
 0x2c9   : > { %797 = vrot.lane.b32.xlu0 %v319_v14, %s1571_s20  ;;  %v597_v14 = vsel %vm386_vm3, %v316_v53, 0 }
 0x328   : > { %v373_v31 = vpop.xlane.xlu1 %372 }
 0x329   : > { %v374_v32 = vsub.f32 %v365_v21, %v373_v31 }
 0x32b   : > { %v375_v33 = vmul.f32 1.442695, %v374_v32 }
 0x32c   : > { %v495_v40 = vpop.permute.xlu1 %494 }
 0x32d   : > { %1349 = vpow2.f32 %v375_v33  ;;  %v500_v42 = vsel %vm386_vm3, %v495_v40, 0 }
 0x330   : > { %v486_v34 = vpop.xlane.xlu0 %485  ;;  %v642_v44 = vpop.permute.xlu1 %641 }
 0x331   : > { %v487_v35 = vsub.f32 %v478_v26, %v486_v34  ;;  %v647_v48 = vsel %vm324_vm2, %v642_v44, 0  ;;  %v314_v26 = vld [vmem:[#allocation7 + $0x10] sm:$0xff] }
 0x332   : > { %v317_v28 = vpack.c.bf16 %v315_v27, %v314_v26 }
 0x333   : > { %v488_v36 = vmul.f32 1.442695, %v487_v35 }
 0x334   : > { %v382_v37 = vpop.permute.xlu0 %381  ;;  %v754_v29 = vsel %vm386_vm3, %v317_v28, 0  ;;  %v909_v51 = vrot.slane %v317_v28, 4 }
 0x335   : > { %1351 = vpow2.f32 %v488_v36  ;;  %v388_v38 = vsel %vm386_vm3, %v382_v37, 0 }
 0x336   : > { %1185 = vmatpush3.bf16.msra.mxu0 %v388_v38  ;;  %v914_v52 = vsel %vm386_vm3, %v909_v51, 0 }
 0x337   : > { %v1350_v39 = vpop.eup %1349  ;;  %1196 = vmatprep.subr.bf16.mxu0 %v1560_v0 }
 0x338   : > { %v380_v41 = vpack.c.bf16 %v1350_v39, %v1350_v39  ;;  %v640_v47 = vpop.permute.xlu0 %639  ;;  %v377_v13 = vsel %vm324_vm2, %v1350_v39, 0.0 }
 0x33a   : > { %1187 = vmatmul.mubr.msk.bf16.vlgmr.msra.gmra.mrb[4].mxu0 %vm324_vm2, %v380_v41 }
 0x33b   : > { %1197 = vmatpush3.bf16.msra.mxu0 %v500_v42  ;;  %1198 = vmatprep.mubr.msk.bf16.mxu0 %vm1561_vm0, %v1560_v0 }
 0x33c   : > { %1214 = vmatprep.subr.bf16.mxu0 %v1560_v0  ;;  %v700_v49 = vpop.permute.xlu0 %699 }
 0x33d   : > { %v705_v50 = vsel %vm386_vm3, %v700_v49, 0 }
 0x33f   : > { %v1352_v43 = vpop.eup %1351 }
 0x340   : > { %v490_v45 = vsel %vm324_vm2, %v1352_v43, 0.0  ;;  %v493_v46 = vpack.c.bf16 %v1352_v43, %v1352_v43  ;;  %v800_v56 = vpop.permute.xlu0 %799 }
 0x341   : > { %491 = vadd.xlane.f32.xlu0 %v490_v45  ;;  %v805_v24 = vsel %vm324_vm2, %v800_v56, 0 }
 0x342   : > { %1199 = vmatmul.mubr.msk.bf16.vlgmr.msra.gmra.mrb[8].mxu0 %vm324_vm2, %v493_v46 }
 0x343   : > { %1216 = vmatprep.mubr.msk.bf16.mxu0 %vm1561_vm0, %v1560_v0 }
 0x344   : > { %1215 = vmatpush3.bf16.xpose.msra.mxu0 %v647_v48  ;;  %v798_v57 = vpop.permute.xlu0 %797 }
 0x345   : > { %1220 = vmatprep.subr.bf16.mxu0 %v1560_v0 }
 0x34b   : > { %1217 = vmatmul.mubr.msk.bf16.vlgmr.msra.gmra.mrb[12].mxu0 %vm324_vm2, %v640_v47 }
 0x34c   : > { %1221 = vmatpush3.bf16.msra.mxu0 %v705_v50  ;;  %1222 = vmatprep.mubr.msk.bf16.mxu0 %vm1561_vm0, %v1560_v0 }
 0x34d   : > { %1232 = vmatprep.subr.bf16.mxu0 %v1560_v0 }
 0x357   : > { %857 = vrot.lane.b32.xlu0 %v1800_v11, %s1572_s28 }
 0x3ce   : > { %v492_v58 = vpop.xlane.xlu0 %491 }
 0x3cf   : > { %1353 = vrcp.f32 %v492_v58 }
 0x3d2   : > { %v858_v35 = vpop.permute.xlu0 %857 }
 0x3d3   : > { %v863_v39 = vsel %vm386_vm3, %v858_v35, 0 }
 0x3d9   : > { %v1354_v63 = vpop.eup %1353 }
 0x40d   : > { %v424_v59 = vpop.f32.mrb[4].mxu0 }
 0x40e   : > { %v1188_v60 = vpop.f32.mrb[5].mxu0 }
 0x40f   : > { %v427_v61 = vpop.f32.mrb[6].mxu0 }
 0x410   : > { %v1189_v62 = vpop.f32.mrb[7].mxu0 }
 0x415   : > { %v536_v1 = vpop.f32.mrb[8].mxu0 }
 0x416   : > { %v543_v2 = vmul.f32 %v1354_v63, %v536_v1  ;;  %v1200_v3 = vpop.f32.mrb[9].mxu0 }
 0x417   : > { %v539_v4 = vpop.f32.mrb[10].mxu0 }
 0x418   : > { %v544_v5 = vpack.c.bf16 %v543_v2, %v543_v2  ;;  %v1201_v6 = vpop.f32.mrb[11].mxu0 }
 0x41a   : > { %1205 = vmatmul.mubr.msk.bf16.vlgmr.msra.gmra.mrb[8].mxu1 %vm324_vm2, %v544_v5 }
 0x41b   : > { %1210 = vmatprep.mubr.msk.bf16.mxu1 %vm1561_vm0, %v1560_v0  ;;  %1209 = vmatpush3.bf16.msra.mxu1 %v597_v14 }
 0x41c   : > { %1226 = vmatprep.subr.bf16.mxu1 %v1560_v0 }
 0x41e   : > { %v683_v7 = vpop.f32.mrb[12].mxu0 }
 0x41f   : > { %v1218_v8 = vpop.f32.mrb[13].mxu0  ;;  %v689_v10 = vsel %vm324_vm2, %v683_v7, -inf }
 0x420   : > { %690 = vmax.xlane.f32.xlu1 %v689_v10  ;;  %v686_v11 = vpop.f32.mrb[14].mxu0 }
 0x421   : > { %v1219_v12 = vpop.f32.mrb[15].mxu0 }
 0x424   : > { %378 = vadd.xlane.f32.xlu1 %v377_v13 }
 0x4ad   : > { %v691_v15 = vpop.xlane.xlu1 %690 }
 0x4ae   : > { %v692_v16 = vsub.f32 %v683_v7, %v691_v15 }
 0x4b0   : > { %v693_v17 = vmul.f32 1.442695, %v692_v16 }
 0x4b1   : > { %v379_v18 = vpop.xlane.xlu1 %378 }
 0x4b2   : > { %1355 = vpow2.f32 %v693_v17 }
 0x4b3   : > { %1357 = vrcp.f32 %v379_v18 }
 0x4bc   : > { %v1356_v19 = vpop.eup %1355 }
 0x4bd   : > { %v1358_v20 = vpop.eup %1357  ;;  %v695_v21 = vsel %vm324_vm2, %v1356_v19, 0.0  ;;  %v698_v22 = vpack.c.bf16 %v1356_v19, %v1356_v19 }
 0x4be   : > { %v431_v23 = vmul.f32 %v1358_v20, %v424_v59  ;;  %696 = vadd.xlane.f32.xlu1 %v695_v21 }
 0x4bf   : > { %1223 = vmatmul.mubr.msk.bf16.vlgmr.msra.gmra.mrb[16].mxu0 %vm324_vm2, %v698_v22 }
 0x4c0   : > { %1233 = vmatpush3.bf16.xpose.msra.mxu0 %v805_v24  ;;  %v432_v25 = vpack.c.bf16 %v431_v23, %v431_v23  ;;  %1234 = vmatprep.mubr.msk.bf16.mxu0 %vm1561_vm0, %v1560_v0 }
 0x4c2   : > { %1211 = vmatmul.mubr.msk.bf16.vlgmr.msra.gmra.mrb[8].mxu1 %vm324_vm2, %v432_v25 }
 0x4c3   : > { %1228 = vmatprep.mubr.msk.bf16.mxu1 %vm1561_vm0, %v1560_v0  ;;  %1227 = vmatpush3.bf16.msra.mxu1 %v754_v29 }
 0x4c4   : > { %1238 = vmatprep.subr.bf16.mxu1 %v1560_v0 }
 0x4c7   : > { %1235 = vmatmul.mubr.msk.bf16.vlgmr.msra.gmra.mrb[20].mxu0 %vm324_vm2, %v798_v57 }
 0x54b   : > { %v697_v30 = vpop.xlane.xlu1 %696 }
 0x54c   : > { %1359 = vrcp.f32 %v697_v30 }
 0x556   : > { %v1360_v31 = vpop.eup %1359 }
 0x592   : > { %v741_v32 = vpop.f32.mrb[16].mxu0 }
 0x593   : > { %v748_v33 = vmul.f32 %v1360_v31, %v741_v32  ;;  %v1224_v34 = vpop.f32.mrb[17].mxu0 }
 0x594   : > { %v744_v36 = vpop.f32.mrb[18].mxu0 }
 0x595   : > { %v749_v37 = vpack.c.bf16 %v748_v33, %v748_v33  ;;  %v1225_v38 = vpop.f32.mrb[19].mxu0 }
 0x597   : > { %1229 = vmatmul.mubr.msk.bf16.vlgmr.msra.gmra.mrb[8].mxu1 %vm324_vm2, %v749_v37 }
 0x598   : > { %1239 = vmatpush3.bf16.msra.mxu1 %v863_v39  ;;  %1240 = vmatprep.mubr.msk.bf16.mxu1 %vm1561_vm0, %v1560_v0 }
 0x599   : > { %1244 = vmatprep.subr.bf16.mxu1 %v1560_v0 }
 0x59a   : > { %v841_v40 = vpop.f32.mrb[20].mxu0 }
 0x59b   : > { %v1236_v41 = vpop.f32.mrb[21].mxu0  ;;  %v847_v42 = vsel %vm324_vm2, %v841_v40, -inf }
 0x59c   : > { %848 = vmax.xlane.f32.xlu1 %v847_v42  ;;  %v844_v43 = vpop.f32.mrb[22].mxu0 }
 0x59d   : > { %v1237_v44 = vpop.f32.mrb[23].mxu0 }
 0x629   : > { %v849_v45 = vpop.xlane.xlu1 %848 }
 0x62a   : > { %v850_v46 = vsub.f32 %v841_v40, %v849_v45 }
 0x62c   : > { %v851_v47 = vmul.f32 1.442695, %v850_v46 }
 0x62e   : > { %1361 = vpow2.f32 %v851_v47 }
 0x638   : > { %v1362_v48 = vpop.eup %1361 }
 0x639   : > { %v853_v49 = vsel %vm324_vm2, %v1362_v48, 0.0  ;;  %v856_v50 = vpack.c.bf16 %v1362_v48, %v1362_v48 }
 0x63a   : > { %854 = vadd.xlane.f32.xlu1 %v853_v49 }
 0x63b   : > { %1241 = vmatmul.mubr.msk.bf16.vlgmr.msra.gmra.mrb[12].mxu1 %vm324_vm2, %v856_v50 }
 0x63c   : > { %1246 = vmatprep.mubr.msk.bf16.mxu1 %vm1561_vm0, %v1560_v0  ;;  %1245 = vmatpush3.bf16.msra.mxu1 %v914_v52 }
 0x64b   : > { %307 = vrot.lane.b32.xlu1 %v1795_v9, %s1562_s21  ;;  %s1882_s21 = scalar_lea.hbm %s1957_s4, %s1139_s12 }
 0x6c7   : > { %v855_v53 = vpop.xlane.xlu1 %854 }
 0x6c8   : > { %1363 = vrcp.f32 %v855_v53 }
 0x6cb   : > { %v308_v54 = vpop.permute.xlu1 %307 }
 0x6cc   : > { %311 = vst.msk [vmem:[%s252_s11] sm:$0xff] %vm310_vm4, %v308_v54 }
 0x6d2   : > { %v1364_v55 = vpop.eup %1363 }
 0x70e   : > { %v899_v56 = vpop.f32.mrb[12].mxu1 }
 0x70f   : > { %v906_v0 = vmul.f32 %v1364_v55, %v899_v56  ;;  %v1242_v57 = vpop.f32.mrb[13].mxu1 }
 0x710   : > { %v902_v58 = vpop.f32.mrb[14].mxu1 }
 0x711   : > { %v907_v9 = vpack.c.bf16 %v906_v0, %v906_v0  ;;  %v1243_v59 = vpop.f32.mrb[15].mxu1 }
 0x713   : > { %1247 = vmatmul.mubr.msk.bf16.vlgmr.msra.gmra.mrb[8].mxu1 %vm324_vm2, %v907_v9 }
 0x714   : > { %1464 = shalt.err (!%p1461_p2)
}
 0x715   : > { %s1465_s10 = scalar_lea.hbm %s1882_s21, 128  ;;  %s1469_s28 = scalar_lea.hbm %s1957_s4, 256 }
 0x716   : > { %p1466_p13 = scmp.ne.s32.totalorder %s1882_s21, %s1465_s10  ;;  %p1470_p4 = scmp.lt.u32.totalorder %s1882_s21, %s1957_s4 }
 0x717   : > { %p1471_p5 = scmp.lt.u32.totalorder %s1469_s28, %s1465_s10  ;;  %p1473_p11 = scmp.lt.u32.totalorder %s1465_s10, %s1882_s21 }
 0x718   : > { %p1467_p6 = pnand %p1466_p13, %p1971_p0 }
 0x719   : > { %p1472_p8 = por %p1471_p5, %p1470_p4 }
 0x71a   : > { %p1468_p10 = pneg %p1467_p6 }
 0x71b   : > { %p1474_p1 = por %p1473_p11, %p1472_p8 }
 0x71d   : > { %p1475_p3 = pnand %p1474_p1, %p1468_p10 }
 0x71f   : > { %1478 = shalt.err (!%p1475_p3)
}
 0x720   : > { %1273 = dma.vmem_to_hbm [thread:$0]  (%p1971_p0), %s991_s23, 128, %s1882_s21, %s964_s27  }
 0x721   : > { %s245_s8 = scalar_lea.vmem [#allocation8], %s1772_s25  ;;  %s1908_s26 = scalar_lea.hbm %s1956_s3, %s1139_s12 }
 0x722   : > { %s977_s30 = sshll.u32 %s245_s8, 4  ;;  %s959_s10 = scalar_lea.sflag [#allocation4], %s1769_s29  ;;  %s1910_s30 = int_to_ptr.vmem [resolvable:$true] %s977_s30 }
 0x723   : > { %s1479_s21 = scalar_lea.vmem %s1910_s30, 128  ;;  %s1574_s19 = smov [#allocation8]  }
 0x724   : > { %p1480_p7 = scmp.ne.s32.totalorder %s1910_s30, %s1479_s21  ;;  %s1483_s25 = sshll.u32 %s1574_s19, 4  ;;  %s1484_s25 = int_to_ptr.vmem [resolvable:$false] %s1483_s25 }
 0x725   : > { %s1485_s12 = scalar_lea.vmem %s1484_s25, 256  ;;  %p1486_p2 = scmp.lt.s32.totalorder %s1910_s30, %s1484_s25 }
 0x726   : > { %p1481_p9 = pnand %p1480_p7, %p1971_p0  ;;  %p1487_p13 = scmp.lt.s32.totalorder %s1485_s12, %s1479_s21 }
 0x728   : > { %p1482_p12 = pneg %p1481_p9  ;;  %p1488_p6 = por %p1487_p13, %p1486_p2 }
 0x72a   : > { %p1489_p10 = pnand %p1488_p6, %p1482_p12 }
 0x7e6   : > { %v950_v60 = vpop.f32.mrb[8].mxu1 }
 0x7e7   : > { %957 = vst.msk [vmem:[%s245_s8] sm:$0xff] %vm262_vm1, %v950_v60  ;;  %v1248_v61 = vpop.f32.mrb[9].mxu1 }
 0x7e8   : > { %v953_v62 = vpop.f32.mrb[10].mxu1 }
 0x7e9   : > { %1492 = shalt.err (!%p1489_p10)
}
 0x7ea   : > { %s1493_s29 = scalar_lea.hbm %s1908_s26, 128  ;;  %s1497_s24 = scalar_lea.hbm %s1956_s3, 256 }
 0x7eb   : > { %p1494_p4 = scmp.ne.s32.totalorder %s1908_s26, %s1493_s29  ;;  %p1498_p11 = scmp.lt.u32.totalorder %s1908_s26, %s1956_s3 }
 0x7ec   : > { %p1499_p1 = scmp.lt.u32.totalorder %s1497_s24, %s1493_s29  ;;  %p1501_p7 = scmp.lt.u32.totalorder %s1493_s29, %s1908_s26 }
 0x7ed   : > { %p1495_p5 = pnand %p1494_p4, %p1971_p0 }
 0x7ee   : > { %p1500_p3 = por %p1499_p1, %p1498_p11 }
 0x7ef   : > { %p1496_p8 = pneg %p1495_p5 }
 0x7f0   : > { %p1502_p9 = por %p1501_p7, %p1500_p3 }
 0x7f2   : > { %p1503_p12 = pnand %p1502_p9, %p1496_p8 }
 0x7f4   : > { %1506 = shalt.err (!%p1503_p12)
}
 0x7f5   : > { %1272 = dma.vmem_to_hbm [thread:$0]  (%p1971_p0), %s1910_s30, 128, %s1908_s26, %s959_s10   ;;  %v1249_v63 = vpop.f32.mrb[11].mxu1 }
 0x7f6 PF: > { %s1002_s11 = sand.u32 1, %s1541_s15   ;;  %p1972_p2 = scmp.ne.s32.totalorder %s1962_s22, 0 }
 0x7f7   : > { %p1973_p13 = scmp.ge.s32.totalorder %s1553_s18, 2  ;;  %s1003_s7 = scalar_lea.sflag [#allocation4], %s1002_s11 }
 0x7f9   : > { %p1288_p6 = pnand %p1973_p13, %p1972_p2 }
 0x7fb   : > { %1532 = dma.done.wait (!%p1288_p6), %s1003_s7, 128  }
 0x7fc   : > { %1534 = vsyncadd (!%p1288_p6), %s1003_s7, 4294967168  ;;  %s1012_s8 = scalar_lea.sflag [#allocation10], %s1002_s11 }
 0x7fd   : > { %1536 = dma.done.wait (!%p1288_p6), %s1012_s8, 128  }
 0x7fe   : > { %1538 = vsyncadd (!%p1288_p6), %s1012_s8, 4294967168  ;;  %p22_p0 = scmp.ge.s32.totalorder %s1710_s9, 4   ;;  %s1974_s15 = smov %s1545_s16 }
 0x7ff   : > { %s1975_s16 = smov %s1549_s17  ;;  %s1976_s17 = smov %s1726_s14 }
 0x800   : > { %s1977_s18 = smov %s1710_s9  ;;  %24 = sbr.rel (!%p22_p0) target bundleno = 8 (0x8), region = 102 }
 0x807   :  { %1017 = vsyncpa [#allocation3], 1 }
 0x808   :  { %1019 = vsyncpa [#allocation3 + $0x1], 1 }
 0x809   :  { %1020 = vsyncpa [#allocation6], 1 }
 0x80a   :  { %1021 = vsyncpa [#allocation4], 1 }
 0x80b   :  { %1023 = vsyncpa [#allocation4 + $0x1], 1 }
 0x80c   :  { %1024 = vsyncpa [#allocation10], 1 }
 0x80d   :  { %1026 = vsyncpa [#allocation10 + $0x1], 1 }

</bundles_post_ra>
